<compile_context>
chip_gen: v7x
topology: tpu7x:2x2x1
jax: 0.10.0
libtpu: 0.0.40
codegen_flags: <defaults>
</compile_context>

<pallas_src>
import jax
import jax.numpy as jnp
from jax.experimental import pallas as pl
from jax.experimental.pallas import tpu as pltpu


_TM_CAP = 1024   # per-step overhead fully amortized by ~512-1024 rows


def _round_up(x, m):
    return -(-x // m) * m


def residual_kernel(m_ref, w1_ref, b1_ref, w2_ref, b2_ref, o_ref):
    """One row tile of: sigmoid(sigmoid(m @ W1t + b1) @ W2t + b2) + m.

    m_ref : (TM, D)  input tile (pipelined / double-buffered)
    w1_ref: (D, D)   first Linear weight, PRE-TRANSPOSED to [in, out], VMEM-resident
    b1_ref: (1, D)   first Linear bias (f32)
    w2_ref: (D, D)   second Linear weight, [in, out], VMEM-resident
    b2_ref: (1, D)   second Linear bias (f32)
    o_ref : (TM, D)  output tile
    """
    m = m_ref[...]
    cdt = w1_ref.dtype                                  # MXU operand dtype

    h = jnp.dot(m.astype(cdt), w1_ref[...], preferred_element_type=jnp.float32)
    h = jax.nn.sigmoid(h + b1_ref[...])                 # f32 on VPU/EUP

    y = jnp.dot(h.astype(cdt), w2_ref[...], preferred_element_type=jnp.float32)
    y = jax.nn.sigmoid(y + b2_ref[...])

    o_ref[...] = (y + m.astype(jnp.float32)).astype(o_ref.dtype)


def _tpu_generation_info():
    """(per-core VMEM bytes, has-two-TensorCores?) with safe fallbacks."""
    try:
        vmem = int(pltpu.get_tpu_info().vmem_capacity_bytes)
    except Exception:
        vmem = 64 * 1024 * 1024          # conservative (v7x per-TC size)
    try:
        kind = jax.devices()[0].device_kind.lower()
    except Exception:
        kind = ""
    two_tc = "v7" in kind                # v5e/v6e: 1 TC/chip; v7x: 2 TC/chip
    return vmem, two_tc


def _choose_tm(n, d, x_bytes, w_bytes, vmem_budget, two_tc):
    """Largest row tile that fits the VMEM budget; only split for 2-TC chips."""
    resident = 2 * d * d * w_bytes + 2 * d * 4          # weights + biases (single copy)
    # double-buffered in/out tiles + f32 temps (h, y) + MXU cast copies
    per_row = 4 * d * x_bytes + 8 * d + 2 * d * w_bytes
    avail = vmem_budget - resident
    if avail < 8 * per_row:
        # TODO(synk): for very large D, K-tile the weights (an "arbitrary" grid
        # axis over D with an f32 accumulator scratch) instead of shrinking rows.
        tm_cap = 256
    else:
        tm_cap = max(8, min(_TM_CAP, (avail // per_row) // 8 * 8))

    if n < 8:
        return n                          # block rows == full array dim (allowed)

    n_floor8 = (n // 8) * 8               # keep block rows <= array rows
    tm = min(tm_cap, n_floor8)

    if two_tc:                            # v7x: feed both TensorCores, evenly
        steps = -(-n // tm)
        if steps == 1 and n_floor8 >= 16:
            tm = min(n_floor8, max(8, _round_up(n_floor8 // 2, 8)))
        elif steps > 1 and steps % 2 == 1:
            steps += 1                    # even, balanced step count
            tm = min(n_floor8, max(8, _round_up(-(-n // steps), 8)))
    return tm


def residual_forward(m, w1, b1, w2, b2, *, tm=None, mxu_dtype=None,
                     input_buffers=None):
    """m: [N, D]; w1, w2: [D, D] in PyTorch [out, in] layout; b1, b2: [D].

    mxu_dtype: optional (e.g. jnp.bfloat16) dtype for MXU operands only;
    accumulation and the elementwise path stay f32.
    input_buffers: optional pipeline depth (e.g. 3) for the m-tile DMA,
    only worth it if a profile shows exposed DMA (most likely v5e).
    """
    N, D = m.shape
    x_bytes = jnp.dtype(m.dtype).itemsize
    w_dtype = jnp.dtype(mxu_dtype) if mxu_dtype is not None else jnp.dtype(w1.dtype)
    w_bytes = w_dtype.itemsize

    vmem_cap, two_tc = _tpu_generation_info()
    vmem_budget = (vmem_cap * 3) // 4                     # ~96 MiB v5e/v6e, ~48 MiB v7x
    vmem_limit = min(vmem_cap - (2 << 20), (vmem_cap * 7) // 8)

    # One-time [out,in] -> [in,out] transpose (and optional bf16 cast) in HBM.
    w1t = jnp.asarray(w1, w_dtype).T
    w2t = jnp.asarray(w2, w_dtype).T
    b1r = jnp.asarray(b1, jnp.float32).reshape(1, D)
    b2r = jnp.asarray(b2, jnp.float32).reshape(1, D)

    if tm is None:
        tm = _choose_tm(N, D, x_bytes, w_bytes, vmem_budget, two_tc)
    tm = min(max(1, tm), max(1, N))
    if N >= 8:
        tm = max(8, (tm // 8) * 8)

    grid = (pl.cdiv(N, tm),)

    out_bytes = jnp.dtype(m.dtype).itemsize
    cost = pl.CostEstimate(
        flops=4 * N * D * D,
        transcendentals=2 * N * D,
        bytes_accessed=N * D * (x_bytes + out_bytes) + 2 * D * D * w_bytes + 2 * D * 4,
    )

    m_spec_kwargs = {}
    if input_buffers is not None:
        m_spec_kwargs["pipeline_mode"] = pl.Buffered(int(input_buffers))

    out = pl.pallas_call(
        residual_kernel,
        out_shape=jax.ShapeDtypeStruct((N, D), m.dtype),
        grid_spec=pltpu.PrefetchScalarGridSpec(
            num_scalar_prefetch=0,
            grid=grid,
            in_specs=[
                pl.BlockSpec((tm, D), lambda i: (i, 0), **m_spec_kwargs),  # m tile
                pl.BlockSpec(memory_space=pltpu.MemorySpace.VMEM),  # w1t: resident
                pl.BlockSpec(memory_space=pltpu.MemorySpace.VMEM),  # b1
                pl.BlockSpec(memory_space=pltpu.MemorySpace.VMEM),  # w2t: resident
                pl.BlockSpec(memory_space=pltpu.MemorySpace.VMEM),  # b2
            ],
            out_specs=pl.BlockSpec((tm, D), lambda i: (i, 0)),
        ),
        compiler_params=pltpu.CompilerParams(
            dimension_semantics=("parallel",),
            vmem_limit_bytes=int(vmem_limit),
        ),
        cost_estimate=cost,
    )(m, w1t, b1r, w2t, b2r)

    return out


def _reference(m, w1, b1, w2, b2):
    h = jax.nn.sigmoid(m @ w1.T + b1)
    y = jax.nn.sigmoid(h @ w2.T + b2)
    return y + m


if __name__ == "__main__":
    key = jax.random.PRNGKey(0)
    # dim=128 keeps the last dim lane-dense (full 128-lane vregs / MXU width);
    # N=256 gives the parallel axis room for 2 grid steps on v7x.
    N, dim = 256, 128

    k_m, k_w1, k_b1, k_w2, k_b2 = jax.random.split(key, 5)

    # PyTorch Linear default init: U(-1/sqrt(in), 1/sqrt(in))
    bound = 1.0 / (dim ** 0.5)
    m = jax.random.normal(k_m, (N, dim), dtype=jnp.float32)
    w1 = jax.random.uniform(k_w1, (dim, dim), jnp.float32, -bound, bound)
    b1 = jax.random.uniform(k_b1, (dim,), jnp.float32, -bound, bound)
    w2 = jax.random.uniform(k_w2, (dim, dim), jnp.float32, -bound, bound)
    b2 = jax.random.uniform(k_b2, (dim,), jnp.float32, -bound, bound)

    ref = _reference(m, w1, b1, w2, b2)

    # f32 MXU path (exact to 1e-5).
    out = jax.block_until_ready(residual_forward(m, w1, b1, w2, b2))
    assert out.shape == (N, dim)
    assert jnp.allclose(out, ref, atol=1e-5, rtol=1e-5), "mismatch vs reference"

    # Ragged row count: partial last block handled by Pallas masking (no pad/slice).
    m_odd = m[:37]
    out_odd = jax.block_until_ready(residual_forward(m_odd, w1, b1, w2, b2))
    assert jnp.allclose(out_odd, _reference(m_odd, w1, b1, w2, b2),
                        atol=1e-5, rtol=1e-5), "mismatch vs reference (odd N)"

    # bf16 MXU operands (f32 accumulation) — looser tolerance for the cast.
    out_bf16 = jax.block_until_ready(
        residual_forward(m, w1, b1, w2, b2, mxu_dtype=jnp.bfloat16))
    assert jnp.allclose(out_bf16, ref, atol=2e-2, rtol=2e-2), "mismatch (bf16 MXU)"

    print("KERNEL_OK")
</pallas_src>

<mosaic_0001>
module attributes {stable_mosaic.version = 11 : i64} {
  func.func @residual_kernel(%arg0: i32, %arg1: memref<256x128xf32, #tpu.memory_space<vmem>>, %arg2: memref<128x128xf32, #tpu.memory_space<vmem>>, %arg3: memref<1x128xf32, #tpu.memory_space<vmem>>, %arg4: memref<128x128xf32, #tpu.memory_space<vmem>>, %arg5: memref<1x128xf32, #tpu.memory_space<vmem>>, %arg6: memref<256x128xf32, #tpu.memory_space<vmem>>) attributes {dimension_semantics = [#tpu.dimension_semantics<parallel>], iteration_bounds = array<i64: 1>, scalar_prefetch = 0 : i64, scratch_operands = 0 : i64, tpu.core_type = #tpu.core_type<tc>, window_params = [{transform_indices = @transform_0, window_bounds = array<i64: 256, 128>}, {pipeline_mode = #tpu.pipeline_mode<synchronous>, transform_indices = @transform_1, window_bounds = array<i64: 128, 128>}, {pipeline_mode = #tpu.pipeline_mode<synchronous>, transform_indices = @transform_2, window_bounds = array<i64: 1, 128>}, {pipeline_mode = #tpu.pipeline_mode<synchronous>, transform_indices = @transform_3, window_bounds = array<i64: 128, 128>}, {pipeline_mode = #tpu.pipeline_mode<synchronous>, transform_indices = @transform_4, window_bounds = array<i64: 1, 128>}, {transform_indices = @transform_5, window_bounds = array<i64: 256, 128>}]} {
    %c0 = arith.constant 0 : index
    %c0_0 = arith.constant 0 : index
    %0 = vector.load %arg1[%c0, %c0_0] : memref<256x128xf32, #tpu.memory_space<vmem>>, vector<256x128xf32>
    %c0_1 = arith.constant 0 : index
    %c0_2 = arith.constant 0 : index
    %1 = vector.load %arg2[%c0_1, %c0_2] : memref<128x128xf32, #tpu.memory_space<vmem>>, vector<128x128xf32>
    %cst = arith.constant dense<0.000000e+00> : vector<256x128xf32>
    %2 = tpu.matmul %0, %1, %cst {dimension_numbers = #tpu.dot_dimension_numbers<[1], [0], [0], [1], [0, 0, 1, 1], [], []>} : vector<256x128xf32>, vector<128x128xf32>, vector<256x128xf32> -> vector<256x128xf32>
    %c0_3 = arith.constant 0 : index
    %c0_4 = arith.constant 0 : index
    %3 = vector.load %arg3[%c0_3, %c0_4] : memref<1x128xf32, #tpu.memory_space<vmem>>, vector<1x128xf32>
    %4 = vector.broadcast %3 : vector<1x128xf32> to vector<256x128xf32>
    %5 = arith.addf %2, %4 : vector<256x128xf32>
    %6 = arith.negf %5 : vector<256x128xf32>
    %7 = math.exp %6 : vector<256x128xf32>
    %cst_5 = arith.constant 1.000000e+00 : f32
    %8 = vector.broadcast %cst_5 : f32 to vector<256x128xf32>
    %9 = arith.addf %8, %7 : vector<256x128xf32>
    %10 = arith.divf %8, %9 : vector<256x128xf32>
    %c0_6 = arith.constant 0 : index
    %c0_7 = arith.constant 0 : index
    %11 = vector.load %arg4[%c0_6, %c0_7] : memref<128x128xf32, #tpu.memory_space<vmem>>, vector<128x128xf32>
    %cst_8 = arith.constant dense<0.000000e+00> : vector<256x128xf32>
    %12 = tpu.matmul %10, %11, %cst_8 {dimension_numbers = #tpu.dot_dimension_numbers<[1], [0], [0], [1], [0, 0, 1, 1], [], []>} : vector<256x128xf32>, vector<128x128xf32>, vector<256x128xf32> -> vector<256x128xf32>
    %c0_9 = arith.constant 0 : index
    %c0_10 = arith.constant 0 : index
    %13 = vector.load %arg5[%c0_9, %c0_10] : memref<1x128xf32, #tpu.memory_space<vmem>>, vector<1x128xf32>
    %14 = vector.broadcast %13 : vector<1x128xf32> to vector<256x128xf32>
    %15 = arith.addf %12, %14 : vector<256x128xf32>
    %16 = arith.negf %15 : vector<256x128xf32>
    %17 = math.exp %16 : vector<256x128xf32>
    %cst_11 = arith.constant 1.000000e+00 : f32
    %18 = vector.broadcast %cst_11 : f32 to vector<256x128xf32>
    %19 = arith.addf %18, %17 : vector<256x128xf32>
    %20 = arith.divf %18, %19 : vector<256x128xf32>
    %21 = arith.addf %20, %0 : vector<256x128xf32>
    %c0_12 = arith.constant 0 : index
    %c0_13 = arith.constant 0 : index
    %22 = vector.load %arg6[%c0_12, %c0_13] : memref<256x128xf32, #tpu.memory_space<vmem>>, vector<256x128xf32>
    tpu.vector_store %arg6[%c0_12, %c0_13], %21 {strides = array<i32>} : memref<256x128xf32, #tpu.memory_space<vmem>>, vector<256x128xf32>,
    return
  }
  func.func @transform_0(%arg0: i32) -> (i32, i32) {
    %c0_i32 = arith.constant 0 : i32
    %c0_i32_0 = arith.constant 0 : i32
    return %arg0, %c0_i32 : i32, i32
  }
  func.func @transform_1(%arg0: i32) -> (i32, i32) {
    %c0_i32 = arith.constant 0 : i32
    %c0_i32_0 = arith.constant 0 : i32
    %c0_i32_1 = arith.constant 0 : i32
    return %c0_i32, %c0_i32_0 : i32, i32
  }
  func.func @transform_2(%arg0: i32) -> (i32, i32) {
    %c0_i32 = arith.constant 0 : i32
    %c0_i32_0 = arith.constant 0 : i32
    %c0_i32_1 = arith.constant 0 : i32
    return %c0_i32, %c0_i32_0 : i32, i32
  }
  func.func @transform_3(%arg0: i32) -> (i32, i32) {
    %c0_i32 = arith.constant 0 : i32
    %c0_i32_0 = arith.constant 0 : i32
    %c0_i32_1 = arith.constant 0 : i32
    return %c0_i32, %c0_i32_0 : i32, i32
  }
  func.func @transform_4(%arg0: i32) -> (i32, i32) {
    %c0_i32 = arith.constant 0 : i32
    %c0_i32_0 = arith.constant 0 : i32
    %c0_i32_1 = arith.constant 0 : i32
    return %c0_i32, %c0_i32_0 : i32, i32
  }
  func.func @transform_5(%arg0: i32) -> (i32, i32) {
    %c0_i32 = arith.constant 0 : i32
    %c0_i32_0 = arith.constant 0 : i32
    return %arg0, %c0_i32 : i32, i32
  }
}

</mosaic_0001>

<bundles_post_ra>
// kernel: tpu_custom_call.1
= control target key start
LH: loop header
LB: loop body
LE: loop exit
PB: predicated region body
PF: predicated region fallthrough
CT: control target
= control target key end

     0   :  { %10 = vsyncpa [#allocation3], 0  ;;  %s2028_s0 = inlined_call_operand.hbm [shape: f32[256,128], index: 0, kind: input, shape index: {}]   ;;  %s2029_s1 = inlined_call_operand.hbm [shape: f32[128,128], index: 1, kind: input, shape index: {}]   ;;  %s2030_s2 = inlined_call_operand.vmem [shape: f32[1,128], index: 2, kind: input, shape index: {}]   ;;  %s2031_s3 = inlined_call_operand.hbm [shape: f32[128,128], index: 3, kind: input, shape index: {}]   ;;  %s2032_s4 = inlined_call_operand.vmem [shape: f32[1,128], index: 4, kind: input, shape index: {}]   ;;  %s2033_s5 = inlined_call_operand.hbm [shape: f32[256,128], index: 5, kind: output, shape index: {}]  }
   0x1   :  { %11 = vsyncpa [#allocation6], 0 }
   0x2   :  { %12 = vsyncpa [#allocation4], 0  ;;  %s1823_s18 = smov [#allocation5]   ;;  %s1824_s20 = smov [#allocation2]  }
   0x3   :  { %s30_s19 = sshll.u32 %s1823_s18, 4  ;;  %s18_s21 = sshll.u32 %s1824_s20, 4  ;;  %s31_s19 = int_to_ptr.vmem [resolvable:$true] %s30_s19  ;;  %s1859_s21 = int_to_ptr.vmem [resolvable:$true] %s18_s21 }
   0x4   :  { %s1729_s24 = scalar_lea.hbm %s2029_s1, 2048 }
   0x5   :  { %p1730_p0 = scmp.ne.s32.totalorder %s2029_s1, %s1729_s24  ;;  %p1733_p1 = scmp.lt.u32.totalorder %s1729_s24, %s2029_s1 }
   0x7   :  { %p1735_p2 = pnand %p1733_p1, %p1730_p0 }
   0x9   :  { %1738 = shalt.err (!%p1735_p2)
}
   0xa   :  { %s1739_s29 = scalar_lea.vmem %s31_s19, 2048  ;;  %p1744_p4 = scmp.lt.s32.totalorder %s31_s19, %s31_s19 }
   0xb   :  { %p1740_p3 = scmp.ne.s32.totalorder %s31_s19, %s1739_s29  ;;  %p1745_p5 = scmp.lt.s32.totalorder %s1739_s29, %s1739_s29 }
   0xd   :  { %p1746_p6 = por %p1745_p5, %p1744_p4 }
   0xf   :  { %p1747_p7 = pnand %p1746_p6, %p1740_p3 }
  0x11   :  { %1750 = shalt.err (!%p1747_p7)
}
  0x12   :  { %s1825_s30 = smov 128   ;;  %s1826_s6 = smov 8  }
  0x13   :  { %36 = dma.hbm_to_vmem [thread:$0]  %s2029_s1, 2048, %s31_s19, [#allocation6], %s1825_s30, %s1825_s30, %s1826_s6  }
  0x14   :  { %s1751_s11 = scalar_lea.hbm %s2028_s0, 4096 }
  0x15   :  { %p1752_p8 = scmp.ne.s32.totalorder %s2028_s0, %s1751_s11  ;;  %p1755_p9 = scmp.lt.u32.totalorder %s1751_s11, %s2028_s0 }
  0x17   :  { %p1757_p10 = pnand %p1755_p9, %p1752_p8 }
  0x19   :  { %1760 = shalt.err (!%p1757_p10)
}
  0x1a   :  { %s1761_s16 = scalar_lea.vmem %s1859_s21, 4096  ;;  %p1766_p12 = scmp.lt.s32.totalorder %s1859_s21, %s1859_s21 }
  0x1b   :  { %p1762_p11 = scmp.ne.s32.totalorder %s1859_s21, %s1761_s16  ;;  %p1767_p13 = scmp.lt.s32.totalorder %s1761_s16, %s1761_s16 }
  0x1d   :  { %p1768_p0 = por %p1767_p13, %p1766_p12 }
  0x1f   :  { %p1769_p1 = pnand %p1768_p0, %p1762_p11 }
  0x21   :  { %1772 = shalt.err (!%p1769_p1)
}
  0x22   :  { %24 = dma.hbm_to_vmem [thread:$0]  %s2028_s0, 4096, %s1859_s21, [#allocation3], %s1825_s30, %s1825_s30, %s1826_s6  }
  0x23   :  { %s1827_s18 = smov [#allocation7]   ;;  %s1773_s23 = scalar_lea.hbm %s2031_s3, 2048 }
  0x24   :  { %s44_s19 = sshll.u32 %s1827_s18, 4  ;;  %p1774_p2 = scmp.ne.s32.totalorder %s2031_s3, %s1773_s23  ;;  %s45_s19 = int_to_ptr.vmem [resolvable:$true] %s44_s19 }
  0x25   :  { %p1777_p3 = scmp.lt.u32.totalorder %s1773_s23, %s2031_s3 }
  0x27   :  { %p1779_p4 = pnand %p1777_p3, %p1774_p2 }
  0x29   :  { %1782 = shalt.err (!%p1779_p4)
}
  0x2a   :  { %s1783_s28 = scalar_lea.vmem %s45_s19, 2048  ;;  %p1788_p6 = scmp.lt.s32.totalorder %s45_s19, %s45_s19 }
  0x2b   :  { %p1784_p5 = scmp.ne.s32.totalorder %s45_s19, %s1783_s28  ;;  %p1789_p7 = scmp.lt.s32.totalorder %s1783_s28, %s1783_s28 }
  0x2d   :  { %p1790_p8 = por %p1789_p7, %p1788_p6 }
  0x2f   :  { %p1791_p9 = pnand %p1790_p8, %p1784_p5 }
  0x31   :  { %1794 = shalt.err (!%p1791_p9)
}
  0x32   :  { %50 = dma.hbm_to_vmem [thread:$0]  %s2031_s3, 2048, %s45_s19, [#allocation6], %s1825_s30, %s1825_s30, %s1826_s6  }
  0x33   :  { %1817 = dma.done.wait [#allocation3], 4096  }
  0x34   :  { %1818 = vsyncadd [#allocation3], 4294963200 }
  0x35   :  { %1819 = dma.done.wait [#allocation6], 4096  }
  0x36   :  { %1820 = vsyncadd [#allocation6], 4294963200  ;;  %v94_v0 = vld [vmem:[#allocation5] sm:$0xff]  ;;  %v95_v1 = vld [vmem:[#allocation5 + $0x8] sm:$0xff] }
  0x37   :  { %v96_v2 = vld [vmem:[#allocation5 + $0x10] sm:$0xff]  ;;  %v1378_v3 = vpack.c.bf16 %v95_v1, %v94_v0  ;;  %v97_v4 = vld [vmem:[#allocation5 + $0x18] sm:$0xff]  ;;  %v98_v6 = vld [vmem:[#allocation5 + $0x20] sm:$0xff] }
  0x38   :  { %v1382_v5 = vpack.c.bf16 %v97_v4, %v96_v2  ;;  %v99_v7 = vld [vmem:[#allocation5 + $0x28] sm:$0xff]  ;;  %v1911_v9 = vld [vmem:[#allocation2] sm:$0xff]  ;;  %v100_v10 = vld [vmem:[#allocation5 + $0x30] sm:$0xff] }
  0x39   :  { %1379 = vmatprep.subr.bf16.mxu0 %v1378_v3  ;;  %v1386_v8 = vpack.c.bf16 %v99_v7, %v98_v6  ;;  %v101_v11 = vld [vmem:[#allocation5 + $0x38] sm:$0xff]  ;;  %1250 = vmatprep.mubr.f32.mxu0 %v1911_v9  ;;  %v102_v13 = vld [vmem:[#allocation5 + $0x40] sm:$0xff]  ;;  %v103_v14 = vld [vmem:[#allocation5 + $0x48] sm:$0xff] }
  0x3a   :  { %1381 = vmatpush3.bf16.msra.mxu0 %v1378_v3  ;;  %v1390_v12 = vpack.c.bf16 %v101_v11, %v100_v10  ;;  %v1394_v15 = vpack.c.bf16 %v103_v14, %v102_v13  ;;  %v104_v16 = vld [vmem:[#allocation5 + $0x50] sm:$0xff]  ;;  %v105_v17 = vld [vmem:[#allocation5 + $0x58] sm:$0xff]  ;;  %v534_v18 = vld [vmem:[#allocation7] sm:$0xff] }
  0x3b   :  { %1383 = vmatprep.subr.bf16.mxu0 %v1382_v5  ;;  %v535_v19 = vld [vmem:[#allocation7 + $0x8] sm:$0xff]  ;;  %v1398_v20 = vpack.c.bf16 %v105_v17, %v104_v16  ;;  %v106_v22 = vld [vmem:[#allocation5 + $0x60] sm:$0xff]  ;;  %v108_v25 = vld [vmem:[#allocation5 + $0x70] sm:$0xff] }
  0x3c   :  { %v1410_v21 = vpack.c.bf16 %v535_v19, %v534_v18  ;;  %v107_v23 = vld [vmem:[#allocation5 + $0x68] sm:$0xff]  ;;  %v109_v26 = vld [vmem:[#allocation5 + $0x78] sm:$0xff]  ;;  %v1916_v29 = vld [vmem:[#allocation2 + $0x10] sm:$0xff] }
  0x3d   :  { %v1402_v24 = vpack.c.bf16 %v107_v23, %v106_v22  ;;  %v1406_v27 = vpack.c.bf16 %v109_v26, %v108_v25  ;;  %v1914_v28 = vld [vmem:[#allocation2 + $0x8] sm:$0xff]  ;;  %v1920_v30 = vld [vmem:[#allocation2 + $0x18] sm:$0xff]  ;;  %v1922_v31 = vld [vmem:[#allocation2 + $0x20] sm:$0xff] }
  0x3e   :  { %1385 = vmatpush3.bf16.msra.mxu0 %v1382_v5  ;;  %1411 = vmatprep.subr.bf16.mxu1 %v1410_v21  ;;  %v1926_v32 = vld [vmem:[#allocation2 + $0x28] sm:$0xff]  ;;  %v68_v33 = vld [vmem:[#allocation2 + $0x30] sm:$0xff]  ;;  %v1929_v34 = vld [vmem:[#allocation2 + $0x38] sm:$0xff] }
  0x3f   :  { %1387 = vmatprep.subr.bf16.mxu0 %v1386_v8  ;;  %1413 = vmatpush3.bf16.msra.mxu1 %v1410_v21  ;;  %v70_v35 = vld [vmem:[#allocation2 + $0x40] sm:$0xff]  ;;  %v71_v36 = vld [vmem:[#allocation2 + $0x48] sm:$0xff]  ;;  %v72_v37 = vld [vmem:[#allocation2 + $0x50] sm:$0xff] }
  0x40   :  { %v73_v38 = vld [vmem:[#allocation2 + $0x58] sm:$0xff]  ;;  %v74_v39 = vld [vmem:[#allocation2 + $0x60] sm:$0xff]  ;;  %v75_v40 = vld [vmem:[#allocation2 + $0x68] sm:$0xff] }
  0x41   :  { %v76_v41 = vld [vmem:[#allocation2 + $0x70] sm:$0xff]  ;;  %v77_v42 = vld [vmem:[#allocation2 + $0x78] sm:$0xff]  ;;  %v78_v43 = vld [vmem:[#allocation2 + $0x80] sm:$0xff] }
  0x42   :  { %1389 = vmatpush3.bf16.msra.mxu0 %v1386_v8  ;;  %v79_v44 = vld [vmem:[#allocation2 + $0x88] sm:$0xff]  ;;  %v80_v45 = vld [vmem:[#allocation2 + $0x90] sm:$0xff]  ;;  %v81_v46 = vld [vmem:[#allocation2 + $0x98] sm:$0xff] }
  0x43   :  { %1391 = vmatprep.subr.bf16.mxu0 %v1390_v12  ;;  %v82_v47 = vld [vmem:[#allocation2 + $0xa0] sm:$0xff]  ;;  %v83_v48 = vld [vmem:[#allocation2 + $0xa8] sm:$0xff]  ;;  %v84_v49 = vld [vmem:[#allocation2 + $0xb0] sm:$0xff] }
  0x44   :  { %v85_v50 = vld [vmem:[#allocation2 + $0xb8] sm:$0xff]  ;;  %v86_v51 = vld [vmem:[#allocation2 + $0xc0] sm:$0xff]  ;;  %v87_v52 = vld [vmem:[#allocation2 + $0xc8] sm:$0xff] }
  0x45   :  { %v88_v53 = vld [vmem:[#allocation2 + $0xd0] sm:$0xff]  ;;  %v89_v54 = vld [vmem:[#allocation2 + $0xd8] sm:$0xff]  ;;  %v90_v55 = vld [vmem:[#allocation2 + $0xe0] sm:$0xff] }
  0x46   :  { %1393 = vmatpush3.bf16.msra.mxu0 %v1390_v12  ;;  %v91_v56 = vld [vmem:[#allocation2 + $0xe8] sm:$0xff]  ;;  %v92_v57 = vld [vmem:[#allocation2 + $0xf0] sm:$0xff]  ;;  %v93_v58 = vld [vmem:[#allocation2 + $0xf8] sm:$0xff] }
  0x47   :  { %1395 = vmatprep.subr.bf16.mxu0 %v1394_v15  ;;  %v536_v59 = vld [vmem:[#allocation7 + $0x10] sm:$0xff]  ;;  %v537_v60 = vld [vmem:[#allocation7 + $0x18] sm:$0xff]  ;;  %v538_v62 = vld [vmem:[#allocation7 + $0x20] sm:$0xff] }
  0x48   :  { %v1414_v61 = vpack.c.bf16 %v537_v60, %v536_v59  ;;  %v539_v63 = vld [vmem:[#allocation7 + $0x28] sm:$0xff]  ;;  %v540_v1 = vld [vmem:[#allocation7 + $0x30] sm:$0xff]  ;;  %v541_v2 = vld [vmem:[#allocation7 + $0x38] sm:$0xff] }
  0x49   :  { %v1418_v0 = vpack.c.bf16 %v539_v63, %v538_v62  ;;  %v1422_v3 = vpack.c.bf16 %v541_v2, %v540_v1  ;;  %v542_v4 = vld [vmem:[#allocation7 + $0x40] sm:$0xff]  ;;  %v543_v5 = vld [vmem:[#allocation7 + $0x48] sm:$0xff]  ;;  %v544_v7 = vld [vmem:[#allocation7 + $0x50] sm:$0xff] }
  0x4a   :  { %1397 = vmatpush3.bf16.msra.mxu0 %v1394_v15  ;;  %1415 = vmatprep.subr.bf16.mxu1 %v1414_v61  ;;  %v1426_v6 = vpack.c.bf16 %v543_v5, %v542_v4  ;;  %v545_v8 = vld [vmem:[#allocation7 + $0x58] sm:$0xff]  ;;  %v546_v11 = vld [vmem:[#allocation7 + $0x60] sm:$0xff]  ;;  %v547_v12 = vld [vmem:[#allocation7 + $0x68] sm:$0xff] }
  0x4b   :  { %1399 = vmatprep.subr.bf16.mxu0 %v1398_v20  ;;  %1417 = vmatpush3.bf16.msra.mxu1 %v1414_v61  ;;  %v1430_v10 = vpack.c.bf16 %v545_v8, %v544_v7  ;;  %v1434_v13 = vpack.c.bf16 %v547_v12, %v546_v11  ;;  %v548_v14 = vld [vmem:[#allocation7 + $0x70] sm:$0xff]  ;;  %v549_v15 = vld [vmem:[#allocation7 + $0x78] sm:$0xff]  ;;  %v1935_v17 = vld [vmem:[%s2030_s2] ss:$0 sm:$0xff] }
  0x4c   :  { %1419 = vmatprep.subr.bf16.mxu1 %v1418_v0  ;;  %v1438_v16 = vpack.c.bf16 %v549_v15, %v548_v14 }
  0x4e   :  { %1401 = vmatpush3.bf16.msra.mxu0 %v1398_v20 }
  0x4f   :  { %1403 = vmatprep.subr.bf16.mxu0 %v1402_v24  ;;  %1421 = vmatpush3.bf16.msra.mxu1 %v1418_v0 }
  0x50   :  { %1423 = vmatprep.subr.bf16.mxu1 %v1422_v3 }
  0x52   :  { %1405 = vmatpush3.bf16.msra.mxu0 %v1402_v24 }
  0x53   :  { %1407 = vmatprep.subr.bf16.mxu0 %v1406_v27  ;;  %1425 = vmatpush3.bf16.msra.mxu1 %v1422_v3 }
  0x54   :  { %1427 = vmatprep.subr.bf16.mxu1 %v1426_v6 }
  0x56   :  { %1409 = vmatpush3.bf16.msra.mxu0 %v1406_v27 }
  0x57   :  { %1429 = vmatpush3.bf16.msra.mxu1 %v1426_v6 }
  0x58   :  { %1431 = vmatprep.subr.bf16.mxu1 %v1430_v10 }
  0x59   :  { %1251 = vmatmul.mubr.f32.vlgmr.msra.gmra.mrb[0].mxu0 %v1914_v28 }
  0x5a   :  { %1253 = vmatprep.mubr.f32.mxu0 %v1916_v29 }
  0x5b   :  { %1433 = vmatpush3.bf16.msra.mxu1 %v1430_v10 }
  0x5c   :  { %1435 = vmatprep.subr.bf16.mxu1 %v1434_v13 }
  0x5d   :  { %1254 = vmatmul.mubr.f32.gmra.mrb[2].mxu0 %v1920_v30 }
  0x5e   :  { %1256 = vmatprep.mubr.f32.mxu0 %v1922_v31 }
  0x5f   :  { %1437 = vmatpush3.bf16.msra.mxu1 %v1434_v13 }
  0x60   :  { %1439 = vmatprep.subr.bf16.mxu1 %v1438_v16 }
  0x61   :  { %1257 = vmatmul.mubr.f32.gmra.mrb[4].mxu0 %v1926_v32 }
  0x62   :  { %1259 = vmatprep.mubr.f32.mxu0 %v68_v33 }
  0x63   :  { %1441 = vmatpush3.bf16.msra.mxu1 %v1438_v16 }
  0x65   :  { %1260 = vmatmul.mubr.f32.gmra.mrb[6].mxu0 %v1929_v34 }
  0x66   :  { %1262 = vmatprep.mubr.f32.mxu0 %v70_v35 }
  0x69   :  { %1263 = vmatmul.mubr.f32.gmra.mrb[8].mxu0 %v71_v36 }
  0x6a   :  { %1265 = vmatprep.mubr.f32.mxu0 %v72_v37 }
  0x6d   :  { %1266 = vmatmul.mubr.f32.gmra.mrb[10].mxu0 %v73_v38 }
  0x6e   :  { %1268 = vmatprep.mubr.f32.mxu0 %v74_v39 }
  0x71   :  { %1269 = vmatmul.mubr.f32.gmra.mrb[12].mxu0 %v75_v40 }
  0x72   :  { %1271 = vmatprep.mubr.f32.mxu0 %v76_v41 }
  0x75   :  { %1272 = vmatmul.mubr.f32.gmra.mrb[14].mxu0 %v77_v42 }
  0x76   :  { %1274 = vmatprep.mubr.f32.mxu0 %v78_v43 }
  0x79   :  { %1275 = vmatmul.mubr.f32.gmra.mrb[16].mxu0 %v79_v44 }
  0x7a   :  { %1277 = vmatprep.mubr.f32.mxu0 %v80_v45 }
  0x7d   :  { %1278 = vmatmul.mubr.f32.gmra.mrb[18].mxu0 %v81_v46 }
  0x7e   :  { %1280 = vmatprep.mubr.f32.mxu0 %v82_v47 }
  0x81   :  { %1281 = vmatmul.mubr.f32.gmra.mrb[20].mxu0 %v83_v48 }
  0x82   :  { %1283 = vmatprep.mubr.f32.mxu0 %v84_v49 }
  0x85   :  { %1284 = vmatmul.mubr.f32.gmra.mrb[22].mxu0 %v85_v50 }
  0x86   :  { %1286 = vmatprep.mubr.f32.mxu0 %v86_v51 }
  0x89   :  { %1287 = vmatmul.mubr.f32.gmra.mrb[24].mxu0 %v87_v52 }
  0x8a   :  { %1289 = vmatprep.mubr.f32.mxu0 %v88_v53 }
  0x8d   :  { %1290 = vmatmul.mubr.f32.gmra.mrb[26].mxu0 %v89_v54 }
  0x8e   :  { %1292 = vmatprep.mubr.f32.mxu0 %v90_v55 }
  0x91   :  { %1293 = vmatmul.mubr.f32.gmra.mrb[28].mxu0 %v91_v56 }
  0x92   :  { %1295 = vmatprep.mubr.f32.mxu0 %v92_v57 }
  0x95   :  { %1296 = vmatmul.mubr.f32.gmra.mrb[30].mxu0 %v93_v58 }
 0x12c   :  { %v1252_v18 = vpop.f32.mrb[0].mxu0 }
 0x12d   :  { %v189_v19 = vadd.f32 %v1252_v18, %v1935_v17  ;;  %v183_v20 = vpop.f32.mrb[1].mxu0 }
 0x12e   :  { %v184_v21 = vadd.f32 %v1935_v17, %v183_v20 }
 0x12f   :  { %v1058_v22 = vmul.f32 -1.442695, %v189_v19 }
 0x130   :  { %v1057_v23 = vmul.f32 -1.442695, %v184_v21  ;;  %v1255_v24 = vpop.f32.mrb[2].mxu0 }
 0x131   :  { %1448 = vpow2.f32 %v1058_v22  ;;  %v199_v25 = vadd.f32 %v1255_v24, %v1935_v17  ;;  %v193_v26 = vpop.f32.mrb[3].mxu0 }
 0x132   :  { %1450 = vpow2.f32 %v1057_v23  ;;  %v194_v27 = vadd.f32 %v1935_v17, %v193_v26 }
 0x133   :  { %v1060_v33 = vmul.f32 -1.442695, %v199_v25 }
 0x134   :  { %v1059_v35 = vmul.f32 -1.442695, %v194_v27  ;;  %v1258_v36 = vpop.f32.mrb[4].mxu0 }
 0x135   :  { %1452 = vpow2.f32 %v1060_v33  ;;  %v209_v37 = vadd.f32 %v1258_v36, %v1935_v17  ;;  %v203_v38 = vpop.f32.mrb[5].mxu0 }
 0x136   :  { %1454 = vpow2.f32 %v1059_v35  ;;  %v204_v39 = vadd.f32 %v1935_v17, %v203_v38 }
 0x137   :  { %v1062_v40 = vmul.f32 -1.442695, %v209_v37 }
 0x138   :  { %v1061_v41 = vmul.f32 -1.442695, %v204_v39  ;;  %v1261_v42 = vpop.f32.mrb[6].mxu0 }
 0x139   :  { %1456 = vpow2.f32 %v1062_v40  ;;  %v219_v43 = vadd.f32 %v1261_v42, %v1935_v17  ;;  %v213_v44 = vpop.f32.mrb[7].mxu0 }
 0x13a   :  { %1458 = vpow2.f32 %v1061_v41  ;;  %v214_v45 = vadd.f32 %v1935_v17, %v213_v44 }
 0x13b   :  { %v1449_v46 = vpop.eup %1448  ;;  %v1064_v47 = vmul.f32 -1.442695, %v219_v43 }
 0x13c   :  { %v1451_v48 = vpop.eup %1450  ;;  %v439_v49 = vadd.f32 1.0, %v1449_v46  ;;  %v1063_v50 = vmul.f32 -1.442695, %v214_v45  ;;  %v1264_v51 = vpop.f32.mrb[8].mxu0 }
 0x13d   :  { %1460 = vpow2.f32 %v1064_v47  ;;  %v229_v52 = vadd.f32 %v1264_v51, %v1935_v17  ;;  %v223_v53 = vpop.f32.mrb[9].mxu0  ;;  %v438_v54 = vadd.f32 1.0, %v1451_v48 }
 0x13e   :  { %1462 = vrcp.f32 %v439_v49  ;;  %v224_v55 = vadd.f32 %v1935_v17, %v223_v53 }
 0x13f   :  { %v1453_v56 = vpop.eup %1452  ;;  %1464 = vpow2.f32 %v1063_v50  ;;  %v1066_v57 = vmul.f32 -1.442695, %v229_v52 }
 0x140   :  { %v1455_v58 = vpop.eup %1454  ;;  %v441_v59 = vadd.f32 1.0, %v1453_v56  ;;  %v1065_v60 = vmul.f32 -1.442695, %v224_v55  ;;  %v1267_v61 = vpop.f32.mrb[10].mxu0  ;;  %1466 = vrcp.f32 %v438_v54 }
 0x141   :  { %v440_v62 = vadd.f32 1.0, %v1455_v58  ;;  %1468 = vpow2.f32 %v1066_v57  ;;  %v239_v63 = vadd.f32 %v1267_v61, %v1935_v17  ;;  %v233_v0 = vpop.f32.mrb[11].mxu0 }
 0x142   :  { %1470 = vrcp.f32 %v441_v59  ;;  %v234_v1 = vadd.f32 %v1935_v17, %v233_v0 }
 0x143   :  { %v1457_v2 = vpop.eup %1456  ;;  %1472 = vrcp.f32 %v440_v62  ;;  %v1068_v3 = vmul.f32 -1.442695, %v239_v63 }
 0x144   :  { %v1459_v4 = vpop.eup %1458  ;;  %v443_v5 = vadd.f32 1.0, %v1457_v2  ;;  %1474 = vpow2.f32 %v1065_v60  ;;  %v1067_v6 = vmul.f32 -1.442695, %v234_v1  ;;  %v1270_v7 = vpop.f32.mrb[12].mxu0 }
 0x145   :  { %v442_v8 = vadd.f32 1.0, %v1459_v4  ;;  %1476 = vpow2.f32 %v1068_v3  ;;  %v249_v10 = vadd.f32 %v1270_v7, %v1935_v17  ;;  %v243_v11 = vpop.f32.mrb[13].mxu0 }
 0x146   :  { %1478 = vrcp.f32 %v443_v5  ;;  %v244_v12 = vadd.f32 %v1935_v17, %v243_v11 }
 0x147   :  { %v1461_v13 = vpop.eup %1460  ;;  %1480 = vrcp.f32 %v442_v8  ;;  %v1070_v14 = vmul.f32 -1.442695, %v249_v10 }
 0x148   :  { %v1463_v15 = vpop.eup %1462  ;;  %v445_v16 = vadd.f32 1.0, %v1461_v13  ;;  %1482 = vpow2.f32 %v1067_v6  ;;  %v1069_v18 = vmul.f32 -1.442695, %v244_v12  ;;  %v1273_v19 = vpop.f32.mrb[14].mxu0 }
 0x149   :  { %v1465_v20 = vpop.eup %1464  ;;  %1484 = vpow2.f32 %v1070_v14  ;;  %v259_v21 = vadd.f32 %v1273_v19, %v1935_v17  ;;  %v253_v22 = vpop.f32.mrb[15].mxu0 }
 0x14a   :  { %v1467_v23 = vpop.eup %1466  ;;  %1486 = vrcp.f32 %v445_v16  ;;  %v444_v24 = vadd.f32 1.0, %v1465_v20  ;;  %v254_v25 = vadd.f32 %v1935_v17, %v253_v22 }
 0x14b   :  { %v1469_v26 = vpop.eup %1468  ;;  %1488 = vpow2.f32 %v1069_v18  ;;  %v1072_v27 = vmul.f32 -1.442695, %v259_v21  ;;  %1330 = vmatprep.mubr.f32.mxu1 %v1467_v23 }
 0x14c   :  { %v1471_v33 = vpop.eup %1470  ;;  %1490 = vrcp.f32 %v444_v24  ;;  %v447_v35 = vadd.f32 1.0, %v1469_v26  ;;  %v1071_v36 = vmul.f32 -1.442695, %v254_v25  ;;  %1331 = vmatmul.mubr.f32.vlgmr.msra.gmra.mrb[0].mxu1 %v1463_v15  ;;  %v1276_v37 = vpop.f32.mrb[16].mxu0 }
 0x14d   :  { %v1473_v38 = vpop.eup %1472  ;;  %1492 = vpow2.f32 %v1072_v27  ;;  %v269_v39 = vadd.f32 %v1276_v37, %v1935_v17  ;;  %v263_v40 = vpop.f32.mrb[17].mxu0 }
 0x14e   :  { %v1475_v41 = vpop.eup %1474  ;;  %v264_v42 = vadd.f32 %v1935_v17, %v263_v40  ;;  %1333 = vmatprep.mubr.f32.mxu1 %v1473_v38  ;;  %1494 = vpow2.f32 %v1071_v36 }
 0x14f   :  { %v1477_v43 = vpop.eup %1476  ;;  %v446_v44 = vadd.f32 1.0, %v1475_v41  ;;  %v1074_v45 = vmul.f32 -1.442695, %v269_v39  ;;  %1496 = vrcp.f32 %v447_v35 }
 0x150   :  { %v1479_v46 = vpop.eup %1478  ;;  %v449_v47 = vadd.f32 1.0, %v1477_v43  ;;  %v1073_v48 = vmul.f32 -1.442695, %v264_v42  ;;  %1334 = vmatmul.mubr.f32.gmra.mrb[2].mxu1 %v1471_v33  ;;  %v1279_v49 = vpop.f32.mrb[18].mxu0 }
 0x151   :  { %v1481_v50 = vpop.eup %1480  ;;  %1498 = vrcp.f32 %v446_v44  ;;  %v279_v51 = vadd.f32 %v1279_v49, %v1935_v17  ;;  %v273_v52 = vpop.f32.mrb[19].mxu0 }
 0x152   :  { %v1483_v53 = vpop.eup %1482  ;;  %1500 = vrcp.f32 %v449_v47  ;;  %v274_v54 = vadd.f32 %v1935_v17, %v273_v52  ;;  %1336 = vmatprep.mubr.f32.mxu1 %v1481_v50 }
 0x153   :  { %v1485_v55 = vpop.eup %1484  ;;  %v448_v56 = vadd.f32 1.0, %v1483_v53  ;;  %1502 = vpow2.f32 %v1074_v45  ;;  %v1076_v57 = vmul.f32 -1.442695, %v279_v51 }
 0x154   :  { %v1487_v58 = vpop.eup %1486  ;;  %v451_v59 = vadd.f32 1.0, %v1485_v55  ;;  %1504 = vpow2.f32 %v1073_v48  ;;  %1337 = vmatmul.mubr.f32.gmra.mrb[4].mxu1 %v1479_v46  ;;  %v1282_v60 = vpop.f32.mrb[20].mxu0  ;;  %v1075_v62 = vmul.f32 -1.442695, %v274_v54 }
 0x155   :  { %v1489_v61 = vpop.eup %1488  ;;  %1506 = vrcp.f32 %v448_v56  ;;  %v289_v63 = vadd.f32 %v1282_v60, %v1935_v17  ;;  %v283_v0 = vpop.f32.mrb[21].mxu0 }
 0x156   :  { %v1491_v1 = vpop.eup %1490  ;;  %1508 = vrcp.f32 %v451_v59  ;;  %v450_v2 = vadd.f32 1.0, %v1489_v61  ;;  %v284_v3 = vadd.f32 %v1935_v17, %v283_v0 }
 0x157   :  { %v1493_v4 = vpop.eup %1492  ;;  %1510 = vpow2.f32 %v1076_v57  ;;  %v1078_v5 = vmul.f32 -1.442695, %v289_v63  ;;  %1339 = vmatprep.mubr.f32.mxu1 %v1491_v1 }
 0x158   :  { %1512 = vrcp.f32 %v450_v2  ;;  %v453_v6 = vadd.f32 1.0, %v1493_v4  ;;  %1340 = vmatmul.mubr.f32.gmra.mrb[6].mxu1 %v1487_v58  ;;  %v1285_v7 = vpop.f32.mrb[22].mxu0  ;;  %v1495_v8 = vpop.eup %1494  ;;  %v1077_v10 = vmul.f32 -1.442695, %v284_v3 }
 0x159   :  { %1514 = vpow2.f32 %v1075_v62  ;;  %v299_v11 = vadd.f32 %v1285_v7, %v1935_v17  ;;  %v293_v12 = vpop.f32.mrb[23].mxu0  ;;  %v1497_v13 = vpop.eup %1496  ;;  %v452_v14 = vadd.f32 1.0, %v1495_v8 }
 0x15a   :  { %1516 = vrcp.f32 %v453_v6  ;;  %v294_v15 = vadd.f32 %v1935_v17, %v293_v12 }
 0x15b   :  { %v1499_v16 = vpop.eup %1498  ;;  %1518 = vpow2.f32 %v1078_v5  ;;  %v1080_v18 = vmul.f32 -1.442695, %v299_v11 }
 0x15c   :  { %v1501_v19 = vpop.eup %1500  ;;  %1520 = vrcp.f32 %v452_v14  ;;  %v1079_v20 = vmul.f32 -1.442695, %v294_v15  ;;  %1342 = vmatprep.mubr.f32.mxu1 %v1499_v16  ;;  %v1288_v21 = vpop.f32.mrb[24].mxu0 }
 0x15d   :  { %v1503_v22 = vpop.eup %1502  ;;  %1522 = vpow2.f32 %v1077_v10  ;;  %1343 = vmatmul.mubr.f32.gmra.mrb[8].mxu1 %v1497_v13  ;;  %v309_v23 = vadd.f32 %v1288_v21, %v1935_v17  ;;  %v303_v24 = vpop.f32.mrb[25].mxu0 }
 0x15e   :  { %v1505_v25 = vpop.eup %1504  ;;  %v455_v26 = vadd.f32 1.0, %v1503_v22  ;;  %1524 = vpow2.f32 %v1080_v18  ;;  %v304_v27 = vadd.f32 %v1935_v17, %v303_v24 }
 0x15f   :  { %v1507_v33 = vpop.eup %1506  ;;  %v454_v35 = vadd.f32 1.0, %v1505_v25  ;;  %1526 = vpow2.f32 %v1079_v20  ;;  %v1082_v36 = vmul.f32 -1.442695, %v309_v23 }
 0x160   :  { %v1509_v37 = vpop.eup %1508  ;;  %1528 = vrcp.f32 %v455_v26  ;;  %v1081_v38 = vmul.f32 -1.442695, %v304_v27  ;;  %1345 = vmatprep.mubr.f32.mxu1 %v1507_v33  ;;  %v1291_v39 = vpop.f32.mrb[26].mxu0 }
 0x161   :  { %v1511_v40 = vpop.eup %1510  ;;  %1530 = vrcp.f32 %v454_v35  ;;  %1346 = vmatmul.mubr.f32.gmra.mrb[10].mxu1 %v1501_v19  ;;  %v319_v41 = vadd.f32 %v1291_v39, %v1935_v17  ;;  %v313_v42 = vpop.f32.mrb[27].mxu0 }
 0x162   :  { %v1513_v43 = vpop.eup %1512  ;;  %v457_v44 = vadd.f32 1.0, %v1511_v40  ;;  %1532 = vpow2.f32 %v1082_v36  ;;  %v314_v45 = vadd.f32 %v1935_v17, %v313_v42 }
 0x163   :  { %v1515_v46 = vpop.eup %1514  ;;  %1534 = vpow2.f32 %v1081_v38  ;;  %v1084_v47 = vmul.f32 -1.442695, %v319_v41  ;;  %1348 = vmatprep.mubr.f32.mxu1 %v1513_v43 }
 0x164   :  { %v1517_v48 = vpop.eup %1516  ;;  %1536 = vrcp.f32 %v457_v44  ;;  %v456_v49 = vadd.f32 1.0, %v1515_v46  ;;  %v1083_v50 = vmul.f32 -1.442695, %v314_v45  ;;  %v1294_v51 = vpop.f32.mrb[28].mxu0 }
 0x165   :  { %v1519_v52 = vpop.eup %1518  ;;  %1538 = vpow2.f32 %v1084_v47  ;;  %1349 = vmatmul.mubr.f32.gmra.mrb[12].mxu1 %v1509_v37  ;;  %v329_v53 = vadd.f32 %v1294_v51, %v1935_v17  ;;  %v323_v54 = vpop.f32.mrb[29].mxu0  ;;  %v1972_v47 = vld [vmem:[%s2032_s4] ss:$0 sm:$0xff]  ;;  %s1828_s4 = smov [#allocation8]  }
 0x166   :  { %v1521_v55 = vpop.eup %1520  ;;  %1540 = vrcp.f32 %v456_v49  ;;  %v324_v56 = vadd.f32 %v1935_v17, %v323_v54  ;;  %v459_v58 = vadd.f32 1.0, %v1519_v52  ;;  %s1043_s8 = sshll.u32 %s1828_s4, 4  ;;  %s1044_s8 = int_to_ptr.vmem [resolvable:$true] %s1043_s8 }
 0x167   :  { %v1523_v57 = vpop.eup %1522  ;;  %1542 = vpow2.f32 %v1083_v50  ;;  %v1086_v59 = vmul.f32 -1.442695, %v329_v53  ;;  %1351 = vmatprep.mubr.f32.mxu1 %v1521_v55  ;;  %s1795_s9 = scalar_lea.vmem %s1044_s8, 4096  ;;  %p1800_p11 = scmp.lt.s32.totalorder %s1044_s8, %s1044_s8 }
 0x168   :  { %v1525_v60 = vpop.eup %1524  ;;  %v458_v61 = vadd.f32 1.0, %v1523_v57  ;;  %v1297_v62 = vpop.f32.mrb[30].mxu0  ;;  %v1085_v0 = vmul.f32 -1.442695, %v324_v56  ;;  %p1796_p10 = scmp.ne.s32.totalorder %s1044_s8, %s1795_s9  ;;  %p1801_p12 = scmp.lt.s32.totalorder %s1795_s9, %s1795_s9 }
 0x169   :  { %v1527_v63 = vpop.eup %1526  ;;  %1544 = vpow2.f32 %v1086_v59  ;;  %1352 = vmatmul.mubr.f32.gmra.mrb[14].mxu1 %v1517_v48  ;;  %v339_v1 = vadd.f32 %v1297_v62, %v1935_v17  ;;  %v333_v2 = vpop.f32.mrb[31].mxu0  ;;  %v461_v7 = vadd.f32 1.0, %v1525_v60 }
 0x16a   :  { %v1529_v3 = vpop.eup %1528  ;;  %1546 = vrcp.f32 %v458_v61  ;;  %v460_v4 = vadd.f32 1.0, %v1527_v63  ;;  %v334_v5 = vadd.f32 %v1935_v17, %v333_v2  ;;  %p1802_p13 = por %p1801_p12, %p1800_p11 }
 0x16b   :  { %v1531_v6 = vpop.eup %1530  ;;  %1548 = vrcp.f32 %v459_v58  ;;  %v1088_v8 = vmul.f32 -1.442695, %v339_v1 }
 0x16c   :  { %v1533_v10 = vpop.eup %1532  ;;  %1550 = vrcp.f32 %v460_v4  ;;  %1354 = vmatprep.mubr.f32.mxu1 %v1531_v6  ;;  %v1087_v12 = vmul.f32 -1.442695, %v334_v5  ;;  %p1803_p0 = pnand %p1802_p13, %p1796_p10 }
 0x16d   :  { %v1535_v11 = vpop.eup %1534  ;;  %1552 = vpow2.f32 %v1085_v0  ;;  %1355 = vmatmul.mubr.f32.gmra.mrb[16].mxu1 %v1529_v3  ;;  %v463_v16 = vadd.f32 1.0, %v1533_v10 }
 0x16e   :  { %v1537_v13 = vpop.eup %1536  ;;  %v462_v14 = vadd.f32 1.0, %v1535_v11  ;;  %1554 = vpow2.f32 %v1088_v8 }
 0x16f   :  { %v1539_v15 = vpop.eup %1538  ;;  %1556 = vrcp.f32 %v461_v7 }
 0x170   :  { %v1541_v18 = vpop.eup %1540  ;;  %1558 = vrcp.f32 %v462_v14  ;;  %v465_v21 = vadd.f32 1.0, %v1539_v15 }
 0x171   :  { %v1543_v17 = vpop.eup %1542  ;;  %1560 = vpow2.f32 %v1087_v12  ;;  %1357 = vmatprep.mubr.f32.mxu1 %v1541_v18 }
 0x172   :  { %v464_v19 = vadd.f32 1.0, %v1543_v17  ;;  %1358 = vmatmul.mubr.f32.gmra.mrb[18].mxu1 %v1537_v13  ;;  %1562 = vrcp.f32 %v463_v16 }
 0x173   :  { %v1545_v20 = vpop.eup %1544 }
 0x174   :  { %v1547_v22 = vpop.eup %1546  ;;  %1564 = vrcp.f32 %v464_v19  ;;  %v467_v26 = vadd.f32 1.0, %v1545_v20 }
 0x175   :  { %v1549_v23 = vpop.eup %1548  ;;  %1360 = vmatprep.mubr.f32.mxu1 %v1547_v22  ;;  %1566 = vrcp.f32 %v465_v21 }
 0x176   :  { %v1551_v24 = vpop.eup %1550  ;;  %1361 = vmatmul.mubr.f32.gmra.mrb[20].mxu1 %v1549_v23 }
 0x177   :  { %v1553_v25 = vpop.eup %1552  ;;  %1363 = vmatprep.mubr.f32.mxu1 %v1551_v24 }
 0x178   :  { %v1555_v27 = vpop.eup %1554  ;;  %v466_v33 = vadd.f32 1.0, %v1553_v25 }
 0x179   :  { %v1557_v35 = vpop.eup %1556  ;;  %v469_v38 = vadd.f32 1.0, %v1555_v27 }
 0x17a   :  { %v1559_v36 = vpop.eup %1558  ;;  %1568 = vrcp.f32 %v466_v33  ;;  %1364 = vmatmul.mubr.f32.gmra.mrb[22].mxu1 %v1557_v35 }
 0x17b   :  { %v1561_v37 = vpop.eup %1560  ;;  %1570 = vrcp.f32 %v467_v26  ;;  %1366 = vmatprep.mubr.f32.mxu1 %v1559_v36 }
 0x17c   :  { %v468_v39 = vadd.f32 1.0, %v1561_v37  ;;  %v1563_v40 = vpop.eup %1562 }
 0x17e   :  { %v1565_v41 = vpop.eup %1564  ;;  %1572 = vrcp.f32 %v468_v39  ;;  %1367 = vmatmul.mubr.f32.gmra.mrb[24].mxu1 %v1563_v40 }
 0x17f   :  { %1574 = vrcp.f32 %v469_v38  ;;  %1369 = vmatprep.mubr.f32.mxu1 %v1565_v41  ;;  %v1567_v42 = vpop.eup %1566 }
 0x182   :  { %1370 = vmatmul.mubr.f32.gmra.mrb[26].mxu1 %v1567_v42 }
 0x184   :  { %v1569_v43 = vpop.eup %1568 }
 0x185   :  { %v1571_v44 = vpop.eup %1570  ;;  %1372 = vmatprep.mubr.f32.mxu1 %v1569_v43 }
 0x186   :  { %1373 = vmatmul.mubr.f32.gmra.mrb[28].mxu1 %v1571_v44 }
 0x188   :  { %v1573_v45 = vpop.eup %1572 }
 0x189   :  { %v1575_v46 = vpop.eup %1574  ;;  %1375 = vmatprep.mubr.f32.mxu1 %v1573_v45 }
 0x18a   :  { %1376 = vmatmul.mubr.f32.gmra.mrb[30].mxu1 %v1575_v46 }
 0x21f   :  { %v1332_v48 = vpop.f32.mrb[0].mxu1 }
 0x220   :  { %v629_v49 = vadd.f32 %v1332_v48, %v1972_v47  ;;  %v623_v50 = vpop.f32.mrb[1].mxu1 }
 0x221   :  { %v624_v51 = vadd.f32 %v1972_v47, %v623_v50 }
 0x222   :  { %v1091_v52 = vmul.f32 -1.442695, %v629_v49 }
 0x223   :  { %v1090_v53 = vmul.f32 -1.442695, %v624_v51  ;;  %v1335_v54 = vpop.f32.mrb[2].mxu1 }
 0x224   :  { %1576 = vpow2.f32 %v1091_v52  ;;  %v639_v55 = vadd.f32 %v1335_v54, %v1972_v47  ;;  %v633_v56 = vpop.f32.mrb[3].mxu1 }
 0x225   :  { %1578 = vpow2.f32 %v1090_v53  ;;  %v634_v57 = vadd.f32 %v1972_v47, %v633_v56 }
 0x226   :  { %v1093_v58 = vmul.f32 -1.442695, %v639_v55 }
 0x227   :  { %v1092_v59 = vmul.f32 -1.442695, %v634_v57  ;;  %v1338_v60 = vpop.f32.mrb[4].mxu1 }
 0x228   :  { %1580 = vpow2.f32 %v1093_v58  ;;  %v649_v61 = vadd.f32 %v1338_v60, %v1972_v47  ;;  %v643_v62 = vpop.f32.mrb[5].mxu1 }
 0x229   :  { %1582 = vpow2.f32 %v1092_v59  ;;  %v644_v63 = vadd.f32 %v1972_v47, %v643_v62 }
 0x22a   :  { %v1095_v0 = vmul.f32 -1.442695, %v649_v61 }
 0x22b   :  { %v1094_v1 = vmul.f32 -1.442695, %v644_v63  ;;  %v1341_v2 = vpop.f32.mrb[6].mxu1 }
 0x22c   :  { %1584 = vpow2.f32 %v1095_v0  ;;  %v659_v3 = vadd.f32 %v1341_v2, %v1972_v47  ;;  %v653_v4 = vpop.f32.mrb[7].mxu1 }
 0x22d   :  { %1586 = vpow2.f32 %v1094_v1  ;;  %v654_v5 = vadd.f32 %v1972_v47, %v653_v4 }
 0x22e   :  { %v1577_v6 = vpop.eup %1576  ;;  %v1097_v7 = vmul.f32 -1.442695, %v659_v3 }
 0x22f   :  { %v1579_v8 = vpop.eup %1578  ;;  %v879_v10 = vadd.f32 1.0, %v1577_v6  ;;  %v1096_v11 = vmul.f32 -1.442695, %v654_v5 }
 0x230   :  { %v878_v12 = vadd.f32 1.0, %v1579_v8  ;;  %1588 = vpow2.f32 %v1097_v7  ;;  %v1344_v13 = vpop.f32.mrb[8].mxu1 }
 0x231   :  { %1590 = vrcp.f32 %v879_v10  ;;  %v669_v14 = vadd.f32 %v1344_v13, %v1972_v47  ;;  %v663_v15 = vpop.f32.mrb[9].mxu1 }
 0x232   :  { %v1581_v16 = vpop.eup %1580  ;;  %1592 = vrcp.f32 %v878_v12  ;;  %v664_v18 = vadd.f32 %v1972_v47, %v663_v15 }
 0x233   :  { %v1583_v17 = vpop.eup %1582  ;;  %v881_v19 = vadd.f32 1.0, %v1581_v16  ;;  %1594 = vpow2.f32 %v1096_v11  ;;  %v1099_v20 = vmul.f32 -1.442695, %v669_v14 }
 0x234   :  { %v880_v21 = vadd.f32 1.0, %v1583_v17  ;;  %v1098_v22 = vmul.f32 -1.442695, %v664_v18  ;;  %v1347_v23 = vpop.f32.mrb[10].mxu1 }
 0x235   :  { %1596 = vrcp.f32 %v881_v19  ;;  %v679_v24 = vadd.f32 %v1347_v23, %v1972_v47  ;;  %v673_v25 = vpop.f32.mrb[11].mxu1 }
 0x236   :  { %v1585_v26 = vpop.eup %1584  ;;  %1598 = vrcp.f32 %v880_v21  ;;  %v674_v27 = vadd.f32 %v1972_v47, %v673_v25 }
 0x237   :  { %v1587_v33 = vpop.eup %1586  ;;  %v883_v35 = vadd.f32 1.0, %v1585_v26  ;;  %1600 = vpow2.f32 %v1099_v20  ;;  %v1101_v36 = vmul.f32 -1.442695, %v679_v24 }
 0x238   :  { %v882_v37 = vadd.f32 1.0, %v1587_v33  ;;  %1602 = vpow2.f32 %v1098_v22  ;;  %v1100_v38 = vmul.f32 -1.442695, %v674_v27  ;;  %v1350_v39 = vpop.f32.mrb[12].mxu1 }
 0x239   :  { %1604 = vrcp.f32 %v883_v35  ;;  %v689_v40 = vadd.f32 %v1350_v39, %v1972_v47  ;;  %v683_v41 = vpop.f32.mrb[13].mxu1 }
 0x23a   :  { %v1589_v42 = vpop.eup %1588  ;;  %1606 = vrcp.f32 %v882_v37  ;;  %v684_v43 = vadd.f32 %v1972_v47, %v683_v41 }
 0x23b   :  { %v1591_v44 = vpop.eup %1590  ;;  %v885_v45 = vadd.f32 1.0, %v1589_v42  ;;  %1608 = vpow2.f32 %v1101_v36  ;;  %v1103_v46 = vmul.f32 -1.442695, %v689_v40  ;;  %v1704_v36 = vld [vmem:[#allocation2 + $0x30] sm:$0xff] }
 0x23c   :  { %v1593_v48 = vpop.eup %1592  ;;  %v975_v49 = vadd.f32 %v1591_v44, %v1914_v28  ;;  %1610 = vpow2.f32 %v1100_v38  ;;  %v1102_v50 = vmul.f32 -1.442695, %v684_v43  ;;  %v1353_v51 = vpop.f32.mrb[14].mxu1 }
 0x23d   :  { %v1595_v52 = vpop.eup %1594  ;;  %v974_v53 = vadd.f32 %v1593_v48, %v1911_v9  ;;  %1612 = vrcp.f32 %v885_v45  ;;  %v699_v54 = vadd.f32 %v1353_v51, %v1972_v47  ;;  %v693_v55 = vpop.f32.mrb[15].mxu1 }
 0x23e   :  { %1007 = vst [vmem:[#allocation8 + $0x8] sm:$0xff] %v975_v49  ;;  %v884_v56 = vadd.f32 1.0, %v1595_v52  ;;  %1614 = vpow2.f32 %v1103_v46  ;;  %v694_v57 = vadd.f32 %v1972_v47, %v693_v55  ;;  %v1705_v49 = vld [vmem:[#allocation2 + $0x48] sm:$0xff] }
 0x23f   :  { %v1597_v58 = vpop.eup %1596  ;;  %1006 = vst [vmem:[#allocation8] sm:$0xff] %v974_v53  ;;  %1616 = vpow2.f32 %v1102_v50  ;;  %v1105_v59 = vmul.f32 -1.442695, %v699_v54  ;;  %v1706_v53 = vld [vmem:[#allocation2 + $0x40] sm:$0xff] }
 0x240   :  { %v1599_v28 = vpop.eup %1598  ;;  %v977_v60 = vadd.f32 %v1597_v58, %v1920_v30  ;;  %1618 = vrcp.f32 %v884_v56  ;;  %v1104_v61 = vmul.f32 -1.442695, %v694_v57  ;;  %v1356_v62 = vpop.f32.mrb[16].mxu1 }
 0x241   :  { %v1601_v9 = vpop.eup %1600  ;;  %v976_v63 = vadd.f32 %v1599_v28, %v1916_v29  ;;  %1620 = vpow2.f32 %v1105_v59  ;;  %v709_v0 = vadd.f32 %v1356_v62, %v1972_v47  ;;  %v703_v1 = vpop.f32.mrb[17].mxu1 }
 0x242   :  { %v1603_v2 = vpop.eup %1602  ;;  %1009 = vst [vmem:[#allocation8 + $0x18] sm:$0xff] %v977_v60  ;;  %v887_v3 = vadd.f32 1.0, %v1601_v9  ;;  %1622 = vpow2.f32 %v1104_v61  ;;  %v704_v4 = vadd.f32 %v1972_v47, %v703_v1 }
 0x243   :  { %v1605_v5 = vpop.eup %1604  ;;  %1008 = vst [vmem:[#allocation8 + $0x10] sm:$0xff] %v976_v63  ;;  %v886_v6 = vadd.f32 1.0, %v1603_v2  ;;  %v1107_v30 = vmul.f32 -1.442695, %v709_v0  ;;  %v1707_v63 = vld [vmem:[#allocation2 + $0x58] sm:$0xff] }
 0x244   :  { %v1607_v7 = vpop.eup %1606  ;;  %v979_v8 = vadd.f32 %v1605_v5, %v1926_v32  ;;  %1624 = vrcp.f32 %v887_v3  ;;  %v1106_v10 = vmul.f32 -1.442695, %v704_v4  ;;  %v1708_v3 = vld [vmem:[#allocation2 + $0x50] sm:$0xff] }
 0x245   :  { %v1609_v29 = vpop.eup %1608  ;;  %v978_v11 = vadd.f32 %v1607_v7, %v1922_v31  ;;  %1626 = vrcp.f32 %v886_v6  ;;  %v1359_v12 = vpop.f32.mrb[18].mxu1 }
 0x246   :  { %v1611_v13 = vpop.eup %1610  ;;  %1011 = vst [vmem:[#allocation8 + $0x28] sm:$0xff] %v979_v8  ;;  %v889_v14 = vadd.f32 1.0, %v1609_v29  ;;  %1628 = vpow2.f32 %v1107_v30  ;;  %v719_v15 = vadd.f32 %v1359_v12, %v1972_v47  ;;  %v713_v16 = vpop.f32.mrb[19].mxu1  ;;  %v1709_v29 = vld [vmem:[#allocation2 + $0x68] sm:$0xff] }
 0x247   :  { %v1613_v18 = vpop.eup %1612  ;;  %1010 = vst [vmem:[#allocation8 + $0x20] sm:$0xff] %v978_v11  ;;  %v888_v17 = vadd.f32 1.0, %v1611_v13  ;;  %1630 = vpow2.f32 %v1106_v10  ;;  %v714_v32 = vadd.f32 %v1972_v47, %v713_v16 }
 0x248   :  { %v1615_v19 = vpop.eup %1614  ;;  %v981_v20 = vadd.f32 %v1613_v18, %v1929_v34  ;;  %1632 = vrcp.f32 %v889_v14  ;;  %v1109_v31 = vmul.f32 -1.442695, %v719_v15  ;;  %v1710_v15 = vld [vmem:[#allocation2 + $0x60] sm:$0xff] }
 0x249   :  { %v1617_v21 = vpop.eup %1616  ;;  %1634 = vrcp.f32 %v888_v17  ;;  %v891_v22 = vadd.f32 1.0, %v1615_v19  ;;  %v1108_v23 = vmul.f32 -1.442695, %v714_v32  ;;  %v1362_v24 = vpop.f32.mrb[20].mxu1 }
 0x24a   :  { %v1619_v25 = vpop.eup %1618  ;;  %1013 = vst [vmem:[#allocation8 + $0x38] sm:$0xff] %v981_v20  ;;  %v890_v26 = vadd.f32 1.0, %v1617_v21  ;;  %1636 = vpow2.f32 %v1109_v31  ;;  %v729_v27 = vadd.f32 %v1362_v24, %v1972_v47  ;;  %v723_v33 = vpop.f32.mrb[21].mxu1  ;;  %v1711_v31 = vld [vmem:[#allocation2 + $0x78] sm:$0xff] }
 0x24b   :  { %v1621_v35 = vpop.eup %1620  ;;  %v980_v37 = vadd.f32 %v1704_v36, %v1619_v25  ;;  %1638 = vrcp.f32 %v891_v22  ;;  %v724_v34 = vadd.f32 %v1972_v47, %v723_v33  ;;  %v1712_v25 = vld [vmem:[#allocation2 + $0x70] sm:$0xff] }
 0x24c   :  { %v1623_v38 = vpop.eup %1622  ;;  %1640 = vrcp.f32 %v890_v26  ;;  %v893_v39 = vadd.f32 1.0, %v1621_v35  ;;  %v1111_v40 = vmul.f32 -1.442695, %v729_v27 }
 0x24d   :  { %1012 = vst [vmem:[#allocation8 + $0x30] sm:$0xff] %v980_v37  ;;  %v892_v41 = vadd.f32 1.0, %v1623_v38  ;;  %1642 = vpow2.f32 %v1108_v23  ;;  %v1110_v42 = vmul.f32 -1.442695, %v724_v34  ;;  %v1365_v43 = vpop.f32.mrb[22].mxu1 }
 0x24e   :  { %v1625_v44 = vpop.eup %1624  ;;  %1644 = vrcp.f32 %v893_v39  ;;  %v739_v45 = vadd.f32 %v1365_v43, %v1972_v47  ;;  %v733_v46 = vpop.f32.mrb[23].mxu1 }
 0x24f   :  { %v1627_v48 = vpop.eup %1626  ;;  %v983_v50 = vadd.f32 %v1705_v49, %v1625_v44  ;;  %1646 = vrcp.f32 %v892_v41  ;;  %v734_v51 = vadd.f32 %v1972_v47, %v733_v46 }
 0x250   :  { %v1629_v52 = vpop.eup %1628  ;;  %v982_v54 = vadd.f32 %v1706_v53, %v1627_v48  ;;  %1648 = vpow2.f32 %v1111_v40  ;;  %v1113_v55 = vmul.f32 -1.442695, %v739_v45  ;;  %v1713_v45 = vld [vmem:[#allocation2 + $0x88] sm:$0xff] }
 0x251   :  { %v1631_v56 = vpop.eup %1630  ;;  %1015 = vst [vmem:[#allocation8 + $0x48] sm:$0xff] %v983_v50  ;;  %v895_v57 = vadd.f32 1.0, %v1629_v52  ;;  %1650 = vpow2.f32 %v1110_v42  ;;  %v1112_v58 = vmul.f32 -1.442695, %v734_v51  ;;  %v1368_v59 = vpop.f32.mrb[24].mxu1  ;;  %v1714_v51 = vld [vmem:[#allocation2 + $0x80] sm:$0xff] }
 0x252   :  { %v1633_v28 = vpop.eup %1632  ;;  %1014 = vst [vmem:[#allocation8 + $0x40] sm:$0xff] %v982_v54  ;;  %v894_v60 = vadd.f32 1.0, %v1631_v56  ;;  %1652 = vpow2.f32 %v1113_v55  ;;  %v749_v61 = vadd.f32 %v1368_v59, %v1972_v47  ;;  %v743_v62 = vpop.f32.mrb[25].mxu1 }
 0x253   :  { %v1635_v9 = vpop.eup %1634  ;;  %v985_v0 = vadd.f32 %v1707_v63, %v1633_v28  ;;  %1654 = vrcp.f32 %v895_v57  ;;  %v744_v1 = vadd.f32 %v1972_v47, %v743_v62  ;;  %v1715_v28 = vld [vmem:[#allocation2 + $0x98] sm:$0xff]  ;;  %v1716_v63 = vld [vmem:[#allocation2 + $0x90] sm:$0xff] }
 0x254   :  { %v1637_v2 = vpop.eup %1636  ;;  %v984_v4 = vadd.f32 %v1708_v3, %v1635_v9  ;;  %1656 = vrcp.f32 %v894_v60  ;;  %v1115_v5 = vmul.f32 -1.442695, %v749_v61 }
 0x255   :  { %v1639_v6 = vpop.eup %1638  ;;  %1017 = vst [vmem:[#allocation8 + $0x58] sm:$0xff] %v985_v0  ;;  %v897_v30 = vadd.f32 1.0, %v1637_v2  ;;  %1658 = vpow2.f32 %v1112_v58  ;;  %v1114_v7 = vmul.f32 -1.442695, %v744_v1  ;;  %v1371_v8 = vpop.f32.mrb[26].mxu1 }
 0x256   :  { %v1641_v10 = vpop.eup %1640  ;;  %1016 = vst [vmem:[#allocation8 + $0x50] sm:$0xff] %v984_v4  ;;  %v987_v11 = vadd.f32 %v1709_v29, %v1639_v6  ;;  %1660 = vpow2.f32 %v1115_v5  ;;  %v759_v12 = vadd.f32 %v1371_v8, %v1972_v47  ;;  %v753_v13 = vpop.f32.mrb[27].mxu1  ;;  %v1717_v6 = vld [vmem:[#allocation2 + $0xa8] sm:$0xff]  ;;  %v1718_v8 = vld [vmem:[#allocation2 + $0xa0] sm:$0xff] }
 0x257   :  { %v1643_v14 = vpop.eup %1642  ;;  %v986_v16 = vadd.f32 %v1710_v15, %v1641_v10  ;;  %1662 = vrcp.f32 %v897_v30  ;;  %v754_v18 = vadd.f32 %v1972_v47, %v753_v13 }
 0x258   :  { %v1645_v17 = vpop.eup %1644  ;;  %1019 = vst [vmem:[#allocation8 + $0x68] sm:$0xff] %v987_v11  ;;  %v896_v32 = vadd.f32 1.0, %v1643_v14  ;;  %1664 = vpow2.f32 %v1114_v7  ;;  %v1117_v19 = vmul.f32 -1.442695, %v759_v12  ;;  %v1719_v11 = vld [vmem:[#allocation2 + $0xb8] sm:$0xff] }
 0x259   :  { %v1647_v20 = vpop.eup %1646  ;;  %1018 = vst [vmem:[#allocation8 + $0x60] sm:$0xff] %v986_v16  ;;  %v989_v21 = vadd.f32 %v1711_v31, %v1645_v17  ;;  %v1116_v22 = vmul.f32 -1.442695, %v754_v18  ;;  %v1374_v23 = vpop.f32.mrb[28].mxu1  ;;  %v1720_v17 = vld [vmem:[#allocation2 + $0xb0] sm:$0xff] }
 0x25a   :  { %v1649_v24 = vpop.eup %1648  ;;  %v988_v26 = vadd.f32 %v1712_v25, %v1647_v20  ;;  %1666 = vrcp.f32 %v896_v32  ;;  %v769_v27 = vadd.f32 %v1374_v23, %v1972_v47  ;;  %v763_v33 = vpop.f32.mrb[29].mxu1  ;;  %v1721_v20 = vld [vmem:[#allocation2 + $0xc8] sm:$0xff] }
 0x25b   :  { %v1651_v35 = vpop.eup %1650  ;;  %1021 = vst [vmem:[#allocation8 + $0x78] sm:$0xff] %v989_v21  ;;  %v899_v36 = vadd.f32 1.0, %v1649_v24  ;;  %1668 = vpow2.f32 %v1117_v19  ;;  %v764_v37 = vadd.f32 %v1972_v47, %v763_v33  ;;  %v1722_v24 = vld [vmem:[#allocation2 + $0xc0] sm:$0xff] }
 0x25c   :  { %v1653_v34 = vpop.eup %1652  ;;  %1020 = vst [vmem:[#allocation8 + $0x70] sm:$0xff] %v988_v26  ;;  %v898_v38 = vadd.f32 1.0, %v1651_v35  ;;  %1670 = vpow2.f32 %v1116_v22  ;;  %v1119_v39 = vmul.f32 -1.442695, %v769_v27  ;;  %v1723_v35 = vld [vmem:[#allocation2 + $0xd8] sm:$0xff] }
 0x25d   :  { %v1655_v40 = vpop.eup %1654  ;;  %1672 = vrcp.f32 %v899_v36  ;;  %v901_v41 = vadd.f32 1.0, %v1653_v34  ;;  %v1118_v42 = vmul.f32 -1.442695, %v764_v37  ;;  %v1377_v43 = vpop.f32.mrb[30].mxu1  ;;  %v1724_v37 = vld [vmem:[#allocation2 + $0xd0] sm:$0xff] }
 0x25e   :  { %v1657_v44 = vpop.eup %1656  ;;  %v991_v46 = vadd.f32 %v1713_v45, %v1655_v40  ;;  %1674 = vrcp.f32 %v898_v38  ;;  %v779_v48 = vadd.f32 %v1377_v43, %v1972_v47  ;;  %v773_v49 = vpop.f32.mrb[31].mxu1  ;;  %v1725_v40 = vld [vmem:[#allocation2 + $0xe8] sm:$0xff]  ;;  %v1727_v45 = vld [vmem:[#allocation2 + $0xf8] sm:$0xff] }
 0x25f   :  { %v1659_v50 = vpop.eup %1658  ;;  %v990_v52 = vadd.f32 %v1714_v51, %v1657_v44  ;;  %1676 = vrcp.f32 %v901_v41  ;;  %v774_v53 = vadd.f32 %v1972_v47, %v773_v49  ;;  %v1728_v49 = vld [vmem:[#allocation2 + $0xf0] sm:$0xff] }
 0x260   :  { %v1661_v54 = vpop.eup %1660  ;;  %1023 = vst [vmem:[#allocation8 + $0x88] sm:$0xff] %v991_v46  ;;  %v900_v55 = vadd.f32 1.0, %v1659_v50  ;;  %1678 = vpow2.f32 %v1119_v39  ;;  %v1121_v56 = vmul.f32 -1.442695, %v779_v48 }
 0x261   :  { %v1663_v57 = vpop.eup %1662  ;;  %1022 = vst [vmem:[#allocation8 + $0x80] sm:$0xff] %v990_v52  ;;  %v903_v58 = vadd.f32 1.0, %v1661_v54  ;;  %1680 = vpow2.f32 %v1118_v42  ;;  %v1120_v61 = vmul.f32 -1.442695, %v774_v53  ;;  %v1726_v42 = vld [vmem:[#allocation2 + $0xe0] sm:$0xff] }
 0x262   :  { %v1665_v59 = vpop.eup %1664  ;;  %v993_v60 = vadd.f32 %v1715_v28, %v1663_v57  ;;  %1682 = vrcp.f32 %v900_v55 }
 0x263   :  { %1684 = vrcp.f32 %v903_v58  ;;  %v902_v62 = vadd.f32 1.0, %v1665_v59 }
 0x264   :  { %v1667_v9 = vpop.eup %1666  ;;  %1025 = vst [vmem:[#allocation8 + $0x98] sm:$0xff] %v993_v60  ;;  %1686 = vpow2.f32 %v1121_v56 }
 0x265   :  { %v1669_v47 = vpop.eup %1668  ;;  %v992_v0 = vadd.f32 %v1716_v63, %v1667_v9  ;;  %1688 = vrcp.f32 %v902_v62 }
 0x266   :  { %v1671_v1 = vpop.eup %1670  ;;  %v905_v2 = vadd.f32 1.0, %v1669_v47  ;;  %1690 = vpow2.f32 %v1120_v61 }
 0x267   :  { %v1673_v3 = vpop.eup %1672  ;;  %1024 = vst [vmem:[#allocation8 + $0x90] sm:$0xff] %v992_v0  ;;  %v904_v4 = vadd.f32 1.0, %v1671_v1 }
 0x268   :  { %v1675_v5 = vpop.eup %1674  ;;  %v995_v30 = vadd.f32 %v1717_v6, %v1673_v3  ;;  %1692 = vrcp.f32 %v905_v2 }
 0x269   :  { %v1677_v7 = vpop.eup %1676  ;;  %v994_v10 = vadd.f32 %v1718_v8, %v1675_v5  ;;  %1694 = vrcp.f32 %v904_v4 }
 0x26a   :  { %v1679_v29 = vpop.eup %1678  ;;  %1027 = vst [vmem:[#allocation8 + $0xa8] sm:$0xff] %v995_v30  ;;  %v997_v12 = vadd.f32 %v1719_v11, %v1677_v7 }
 0x26b   :  { %v1681_v13 = vpop.eup %1680  ;;  %1026 = vst [vmem:[#allocation8 + $0xa0] sm:$0xff] %v994_v10  ;;  %v907_v14 = vadd.f32 1.0, %v1679_v29 }
 0x26c   :  { %v1683_v15 = vpop.eup %1682  ;;  %1029 = vst [vmem:[#allocation8 + $0xb8] sm:$0xff] %v997_v12  ;;  %v906_v16 = vadd.f32 1.0, %v1681_v13 }
 0x26d   :  { %v1685_v18 = vpop.eup %1684  ;;  %v996_v32 = vadd.f32 %v1720_v17, %v1683_v15  ;;  %1696 = vrcp.f32 %v907_v14 }
 0x26e   :  { %v1687_v19 = vpop.eup %1686  ;;  %v999_v31 = vadd.f32 %v1721_v20, %v1685_v18  ;;  %1698 = vrcp.f32 %v906_v16 }
 0x26f   :  { %v1689_v21 = vpop.eup %1688  ;;  %1028 = vst [vmem:[#allocation8 + $0xb0] sm:$0xff] %v996_v32  ;;  %v909_v22 = vadd.f32 1.0, %v1687_v19 }
 0x270   :  { %v1691_v23 = vpop.eup %1690  ;;  %1031 = vst [vmem:[#allocation8 + $0xc8] sm:$0xff] %v999_v31  ;;  %v998_v25 = vadd.f32 %v1722_v24, %v1689_v21 }
 0x271   :  { %1700 = vrcp.f32 %v909_v22  ;;  %v908_v26 = vadd.f32 1.0, %v1691_v23 }
 0x272   :  { %v1693_v27 = vpop.eup %1692  ;;  %1030 = vst [vmem:[#allocation8 + $0xc0] sm:$0xff] %v998_v25 }
 0x273   :  { %v1695_v33 = vpop.eup %1694  ;;  %v1001_v36 = vadd.f32 %v1723_v35, %v1693_v27  ;;  %1702 = vrcp.f32 %v908_v26 }
 0x274   :  { %v1000_v34 = vadd.f32 %v1724_v37, %v1695_v33 }
 0x275   :  { %1033 = vst [vmem:[#allocation8 + $0xd8] sm:$0xff] %v1001_v36 }
 0x276   :  { %1032 = vst [vmem:[#allocation8 + $0xd0] sm:$0xff] %v1000_v34 }
 0x277   :  { %v1697_v38 = vpop.eup %1696 }
 0x278   :  { %v1699_v39 = vpop.eup %1698  ;;  %v1003_v41 = vadd.f32 %v1725_v40, %v1697_v38 }
 0x279   :  { %v1002_v43 = vadd.f32 %v1726_v42, %v1699_v39 }
 0x27a   :  { %1035 = vst [vmem:[#allocation8 + $0xe8] sm:$0xff] %v1003_v41 }
 0x27b   :  { %v1701_v44 = vpop.eup %1700  ;;  %1034 = vst [vmem:[#allocation8 + $0xe0] sm:$0xff] %v1002_v43 }
 0x27c   :  { %v1005_v46 = vadd.f32 %v1727_v45, %v1701_v44 }
 0x27d   :  { %v1703_v48 = vpop.eup %1702 }
 0x27e   :  { %1037 = vst [vmem:[#allocation8 + $0xf8] sm:$0xff] %v1005_v46  ;;  %v1004_v50 = vadd.f32 %v1728_v49, %v1703_v48 }
 0x280   :  { %1036 = vst [vmem:[#allocation8 + $0xf0] sm:$0xff] %v1004_v50 }
 0x281   :  { %1806 = shalt.err (!%p1803_p0)
}
 0x282   :  { %s1807_s12 = scalar_lea.hbm %s2033_s5, 4096 }
 0x283   :  { %p1808_p1 = scmp.ne.s32.totalorder %s2033_s5, %s1807_s12  ;;  %p1811_p2 = scmp.lt.u32.totalorder %s1807_s12, %s2033_s5 }
 0x285   :  { %p1813_p3 = pnand %p1811_p2, %p1808_p1 }
 0x287   :  { %1816 = shalt.err (!%p1813_p3)
}
 0x288   :  { %1049 = dma.vmem_to_hbm [thread:$0]  %s1044_s8, 4096, %s2033_s5, [#allocation4], %s1825_s30, %s1825_s30, %s1826_s6  }
 0x289   :  { %1821 = dma.done.wait [#allocation4], 4096  }
 0x28a   :  { %1822 = vsyncadd [#allocation4], 4294963200 }
 0x28b   :  { %1053 = vsyncpa [#allocation3], 1 }
 0x28c   :  { %1054 = vsyncpa [#allocation6], 1 }
 0x28d   :  { %1055 = vsyncpa [#allocation4], 1 }

</bundles_post_ra>
